<compile_context>
chip_gen: v6e
topology: v6e:2x2x1
jax: 0.10.0
libtpu: 0.0.40
codegen_flags: <defaults>
</compile_context>

<pallas_src>
import jax
import jax.numpy as jnp
from jax.experimental import pallas as pl
from jax.experimental.pallas import tpu as pltpu

ALPHA = 1.0
GAMMA = 2.0   # implemented as an explicit square below
LANES = 128


def _losses_kernel(logit_ref, label_ref, vel_ref, vel_label_ref,
                   frame_ref, vel_loss_ref):
    # logit_ref: (C, TR, 128); others: (TR, 128)
    label = label_ref[...]                                   # int32
    vel = vel_ref[...].astype(jnp.float32)
    vel_label = vel_label_ref[...].astype(jnp.float32)

    C = logit_ref.shape[0]

    # Load the C class planes (lane-dense), unrolled over the tiny class axis.
    planes = [logit_ref[c].astype(jnp.float32) for c in range(C)]

    # Row-wise max over classes — pure VPU register chain (no XLU reduction).
    m = planes[0]
    for c in range(1, C):
        m = jnp.maximum(m, planes[c])

    # sum of exp(z - m) and the target-class (z - m), gathered via a where-chain.
    sum_exp = jnp.zeros_like(m)
    z_t = jnp.zeros_like(m)
    for c in range(C):
        zc = planes[c] - m
        sum_exp = sum_exp + jnp.exp(zc)
        z_t = jnp.where(label == c, zc, z_t)

    lse = jnp.log(sum_exp)
    ce = lse - z_t                       # cross entropy at the target class
    pt = jnp.exp(-ce)                    # softmax prob of the target class
    one_minus_pt = 1.0 - pt
    frame = ALPHA * (one_minus_pt * one_minus_pt) * ce       # gamma = 2 -> square
    frame_ref[...] = frame.astype(frame_ref.dtype)

    # Masked velocity MSE: (vel*m - (vel_label/128)*m)^2 == ((vel - vel_label/128)*m)^2
    onset_mask = jnp.logical_or(label == 2, label == 4).astype(jnp.float32)
    diff = (vel - vel_label * (1.0 / 128.0)) * onset_mask
    vel_loss_ref[...] = (diff * diff).astype(vel_loss_ref.dtype)


def losses_forward(logit, vel, label, vel_label, *, tile_rows=1024,
                   logits_in_bf16=False):
    """logit: (B,T,P,C) float, vel: (B,T,P) float, label: (B,T,P) int,
    vel_label: (B,T,P) float (raw 0..127 velocities).
    Returns (frame_loss, vel_loss), each (B,T,P) float32 (no reduction).

    `logits_in_bf16=True` halves logit HBM traffic (math stays f32 in-kernel)."""
    B, T, P, C = logit.shape
    N = B * T * P

    # ---- lane-dense layout: flatten everything to (rows, 128), pad rows ----
    n_rows = pl.cdiv(N, LANES)
    tile_rows = min(tile_rows, n_rows)
    if tile_rows < n_rows:
        tile_rows = max(8, (tile_rows // 8) * 8)     # (8,128) tiling constraint
    grid_len = pl.cdiv(n_rows, tile_rows)
    padded_rows = grid_len * tile_rows
    padded_N = padded_rows * LANES
    pad = padded_N - N

    # logit: (B,T,P,C) -> (C, N) -> padded (C, rows, 128); class axis OFF lanes.
    logit_f = jnp.moveaxis(logit, -1, 0).reshape(C, N)
    logit_f = jnp.pad(logit_f, ((0, 0), (0, pad))).reshape(C, padded_rows, LANES)
    if logits_in_bf16:
        logit_f = logit_f.astype(jnp.bfloat16)

    def flat2d(x, dtype):
        x = x.reshape(N).astype(dtype)
        x = jnp.pad(x, (0, pad))                     # pad value 0 (in-range label)
        return x.reshape(padded_rows, LANES)

    label_f = flat2d(label, jnp.int32)
    vel_f = flat2d(vel, jnp.float32)
    vel_label_f = flat2d(vel_label, jnp.float32)

    spec_logit = pl.BlockSpec((C, tile_rows, LANES), lambda i: (0, i, 0))
    spec2 = pl.BlockSpec((tile_rows, LANES), lambda i: (i, 0))

    bytes_in = (logit_f.size * logit_f.dtype.itemsize
                + 3 * padded_N * 4)
    bytes_out = 2 * padded_N * 4
    cost = pl.CostEstimate(
        flops=padded_N * (8 * C + 12),
        transcendentals=padded_N * (C + 2),          # C+1 exp, 1 log per element
        bytes_accessed=bytes_in + bytes_out,
    )

    frame_p, vel_p = pl.pallas_call(
        _losses_kernel,
        out_shape=(
            jax.ShapeDtypeStruct((padded_rows, LANES), jnp.float32),
            jax.ShapeDtypeStruct((padded_rows, LANES), jnp.float32),
        ),
        grid_spec=pltpu.PrefetchScalarGridSpec(
            num_scalar_prefetch=0,
            grid=(grid_len,),
            in_specs=[spec_logit, spec2, spec2, spec2],
            out_specs=[spec2, spec2],
        ),
        compiler_params=pltpu.CompilerParams(
            dimension_semantics=("parallel",),
            vmem_limit_bytes=32 << 20),
        cost_estimate=cost,
    )(logit_f, label_f, vel_f, vel_label_f)

    frame_loss = frame_p.reshape(padded_N)[:N].reshape(B, T, P)
    vel_loss = vel_p.reshape(padded_N)[:N].reshape(B, T, P)
    return frame_loss, vel_loss


def _reference(logit, vel, label, vel_label):
    # pure-JAX reference for sanity check
    logp = jax.nn.log_softmax(logit.astype(jnp.float32), axis=-1)
    ce = -jnp.take_along_axis(logp, label[..., None], axis=-1)[..., 0]
    pt = jnp.exp(-ce)
    frame = ALPHA * (1.0 - pt) ** GAMMA * ce
    mask = ((label == 2) | (label == 4)).astype(jnp.float32)
    diff = vel * mask - (vel_label / 128.0) * mask
    return frame, diff * diff


if __name__ == "__main__":
    # small shapes: batch=2, time=8, pitch=16, classes=5 (off/offset/onset/sustain/reonset)
    B, T, P, C = 2, 8, 16, 5
    key = jax.random.PRNGKey(0)
    k1, k2, k3, k4 = jax.random.split(key, 4)

    logit = jax.random.normal(k1, (B, T, P, C), dtype=jnp.float32)
    vel = jax.random.uniform(k2, (B, T, P), dtype=jnp.float32)
    label = jax.random.randint(k3, (B, T, P), 0, C, dtype=jnp.int32)
    vel_label = jax.random.randint(k4, (B, T, P), 0, 128).astype(jnp.float32)

    frame_loss, vel_loss = losses_forward(logit, vel, label, vel_label)
    jax.block_until_ready((frame_loss, vel_loss))

    ref_frame, ref_vel = _reference(logit, vel, label, vel_label)
    assert jnp.allclose(frame_loss, ref_frame, atol=1e-5, rtol=1e-5)
    assert jnp.allclose(vel_loss, ref_vel, atol=1e-5, rtol=1e-5)

    print("KERNEL_OK")
</pallas_src>

<mosaic_0001>
module attributes {stable_mosaic.version = 11 : i64} {
  func.func @_losses_kernel(%arg0: i32, %arg1: memref<5x2x128xf32, #tpu.memory_space<vmem>>, %arg2: memref<2x128xi32, #tpu.memory_space<vmem>>, %arg3: memref<2x128xf32, #tpu.memory_space<vmem>>, %arg4: memref<2x128xf32, #tpu.memory_space<vmem>>, %arg5: memref<2x128xf32, #tpu.memory_space<vmem>>, %arg6: memref<2x128xf32, #tpu.memory_space<vmem>>) attributes {dimension_semantics = [#tpu.dimension_semantics<parallel>], iteration_bounds = array<i64: 1>, scalar_prefetch = 0 : i64, scratch_operands = 0 : i64, tpu.core_type = #tpu.core_type<tc>, window_params = [{transform_indices = @transform_0, window_bounds = array<i64: 5, 2, 128>}, {transform_indices = @transform_1, window_bounds = array<i64: 2, 128>}, {transform_indices = @transform_2, window_bounds = array<i64: 2, 128>}, {transform_indices = @transform_3, window_bounds = array<i64: 2, 128>}, {transform_indices = @transform_4, window_bounds = array<i64: 2, 128>}, {transform_indices = @transform_5, window_bounds = array<i64: 2, 128>}]} {
    %c0 = arith.constant 0 : index
    %c0_0 = arith.constant 0 : index
    %0 = vector.load %arg2[%c0, %c0_0] : memref<2x128xi32, #tpu.memory_space<vmem>>, vector<2x128xi32>
    %c0_1 = arith.constant 0 : index
    %c0_2 = arith.constant 0 : index
    %1 = vector.load %arg3[%c0_1, %c0_2] : memref<2x128xf32, #tpu.memory_space<vmem>>, vector<2x128xf32>
    %c0_3 = arith.constant 0 : index
    %c0_4 = arith.constant 0 : index
    %2 = vector.load %arg4[%c0_3, %c0_4] : memref<2x128xf32, #tpu.memory_space<vmem>>, vector<2x128xf32>
    %c0_5 = arith.constant 0 : index
    %c0_6 = arith.constant 0 : index
    %c0_7 = arith.constant 0 : index
    %3 = vector.load %arg1[%c0_5, %c0_6, %c0_7] : memref<5x2x128xf32, #tpu.memory_space<vmem>>, vector<1x2x128xf32>
    %4 = vector.shape_cast %3 : vector<1x2x128xf32> to vector<2x128xf32>
    %c1 = arith.constant 1 : index
    %c0_8 = arith.constant 0 : index
    %c0_9 = arith.constant 0 : index
    %5 = vector.load %arg1[%c1, %c0_8, %c0_9] : memref<5x2x128xf32, #tpu.memory_space<vmem>>, vector<1x2x128xf32>
    %6 = vector.shape_cast %5 : vector<1x2x128xf32> to vector<2x128xf32>
    %c2 = arith.constant 2 : index
    %c0_10 = arith.constant 0 : index
    %c0_11 = arith.constant 0 : index
    %7 = vector.load %arg1[%c2, %c0_10, %c0_11] : memref<5x2x128xf32, #tpu.memory_space<vmem>>, vector<1x2x128xf32>
    %8 = vector.shape_cast %7 : vector<1x2x128xf32> to vector<2x128xf32>
    %c3 = arith.constant 3 : index
    %c0_12 = arith.constant 0 : index
    %c0_13 = arith.constant 0 : index
    %9 = vector.load %arg1[%c3, %c0_12, %c0_13] : memref<5x2x128xf32, #tpu.memory_space<vmem>>, vector<1x2x128xf32>
    %10 = vector.shape_cast %9 : vector<1x2x128xf32> to vector<2x128xf32>
    %c4 = arith.constant 4 : index
    %c0_14 = arith.constant 0 : index
    %c0_15 = arith.constant 0 : index
    %11 = vector.load %arg1[%c4, %c0_14, %c0_15] : memref<5x2x128xf32, #tpu.memory_space<vmem>>, vector<1x2x128xf32>
    %12 = vector.shape_cast %11 : vector<1x2x128xf32> to vector<2x128xf32>
    %13 = arith.maximumf %4, %6 : vector<2x128xf32>
    %14 = arith.maximumf %13, %8 : vector<2x128xf32>
    %15 = arith.maximumf %14, %10 : vector<2x128xf32>
    %16 = arith.maximumf %15, %12 : vector<2x128xf32>
    %cst = arith.constant 0.000000e+00 : f32
    %17 = vector.broadcast %cst : f32 to vector<2x128xf32>
    %cst_16 = arith.constant 0.000000e+00 : f32
    %18 = vector.broadcast %cst_16 : f32 to vector<2x128xf32>
    %19 = arith.subf %4, %16 : vector<2x128xf32>
    %20 = math.exp %19 : vector<2x128xf32>
    %21 = arith.addf %17, %20 : vector<2x128xf32>
    %c0_i32 = arith.constant 0 : i32
    %22 = vector.broadcast %c0_i32 : i32 to vector<2x128xi32>
    %23 = arith.cmpi eq, %0, %22 : vector<2x128xi32>
    %24 = arith.select %23, %19, %18 : vector<2x128xi1>, vector<2x128xf32>
    %25 = arith.subf %6, %16 : vector<2x128xf32>
    %26 = math.exp %25 : vector<2x128xf32>
    %27 = arith.addf %21, %26 : vector<2x128xf32>
    %c1_i32 = arith.constant 1 : i32
    %28 = vector.broadcast %c1_i32 : i32 to vector<2x128xi32>
    %29 = arith.cmpi eq, %0, %28 : vector<2x128xi32>
    %30 = arith.select %29, %25, %24 : vector<2x128xi1>, vector<2x128xf32>
    %31 = arith.subf %8, %16 : vector<2x128xf32>
    %32 = math.exp %31 : vector<2x128xf32>
    %33 = arith.addf %27, %32 : vector<2x128xf32>
    %c2_i32 = arith.constant 2 : i32
    %34 = vector.broadcast %c2_i32 : i32 to vector<2x128xi32>
    %35 = arith.cmpi eq, %0, %34 : vector<2x128xi32>
    %36 = arith.select %35, %31, %30 : vector<2x128xi1>, vector<2x128xf32>
    %37 = arith.subf %10, %16 : vector<2x128xf32>
    %38 = math.exp %37 : vector<2x128xf32>
    %39 = arith.addf %33, %38 : vector<2x128xf32>
    %c3_i32 = arith.constant 3 : i32
    %40 = vector.broadcast %c3_i32 : i32 to vector<2x128xi32>
    %41 = arith.cmpi eq, %0, %40 : vector<2x128xi32>
    %42 = arith.select %41, %37, %36 : vector<2x128xi1>, vector<2x128xf32>
    %43 = arith.subf %12, %16 : vector<2x128xf32>
    %44 = math.exp %43 : vector<2x128xf32>
    %45 = arith.addf %39, %44 : vector<2x128xf32>
    %c4_i32 = arith.constant 4 : i32
    %46 = vector.broadcast %c4_i32 : i32 to vector<2x128xi32>
    %47 = arith.cmpi eq, %0, %46 : vector<2x128xi32>
    %48 = arith.select %47, %43, %42 : vector<2x128xi1>, vector<2x128xf32>
    %49 = math.log %45 : vector<2x128xf32>
    %50 = arith.subf %49, %48 : vector<2x128xf32>
    %cst_17 = arith.constant 0.000000e+00 : f32
    %51 = vector.broadcast %cst_17 : f32 to vector<2x128xf32>
    %52 = arith.subf %51, %50 : vector<2x128xf32>
    %53 = math.exp %52 : vector<2x128xf32>
    %cst_18 = arith.constant 1.000000e+00 : f32
    %54 = vector.broadcast %cst_18 : f32 to vector<2x128xf32>
    %55 = arith.subf %54, %53 : vector<2x128xf32>
    %56 = arith.mulf %55, %55 : vector<2x128xf32>
    %cst_19 = arith.constant 1.000000e+00 : f32
    %57 = vector.broadcast %cst_19 : f32 to vector<2x128xf32>
    %58 = arith.mulf %57, %56 : vector<2x128xf32>
    %59 = arith.mulf %58, %50 : vector<2x128xf32>
    %c0_20 = arith.constant 0 : index
    %c0_21 = arith.constant 0 : index
    %60 = vector.load %arg5[%c0_20, %c0_21] : memref<2x128xf32, #tpu.memory_space<vmem>>, vector<2x128xf32>
    tpu.vector_store %arg5[%c0_20, %c0_21], %59 {strides = array<i32>} : memref<2x128xf32, #tpu.memory_space<vmem>>, vector<2x128xf32>,
    %c2_i32_22 = arith.constant 2 : i32
    %61 = vector.broadcast %c2_i32_22 : i32 to vector<2x128xi32>
    %62 = arith.cmpi eq, %0, %61 : vector<2x128xi32>
    %c4_i32_23 = arith.constant 4 : i32
    %63 = vector.broadcast %c4_i32_23 : i32 to vector<2x128xi32>
    %64 = arith.cmpi eq, %0, %63 : vector<2x128xi32>
    %65 = arith.ori %62, %64 : vector<2x128xi1>
    %66 = arith.extui %65 : vector<2x128xi1> to vector<2x128xi32>
    %67 = arith.sitofp %66 : vector<2x128xi32> to vector<2x128xf32>
    %cst_24 = arith.constant 7.812500e-03 : f32
    %68 = vector.broadcast %cst_24 : f32 to vector<2x128xf32>
    %69 = arith.mulf %2, %68 : vector<2x128xf32>
    %70 = arith.subf %1, %69 : vector<2x128xf32>
    %71 = arith.mulf %70, %67 : vector<2x128xf32>
    %72 = arith.mulf %71, %71 : vector<2x128xf32>
    %c0_25 = arith.constant 0 : index
    %c0_26 = arith.constant 0 : index
    %73 = vector.load %arg6[%c0_25, %c0_26] : memref<2x128xf32, #tpu.memory_space<vmem>>, vector<2x128xf32>
    tpu.vector_store %arg6[%c0_25, %c0_26], %72 {strides = array<i32>} : memref<2x128xf32, #tpu.memory_space<vmem>>, vector<2x128xf32>,
    return
  }
  func.func @transform_0(%arg0: i32) -> (i32, i32, i32) {
    %c0_i32 = arith.constant 0 : i32
    %c0_i32_0 = arith.constant 0 : i32
    %c0_i32_1 = arith.constant 0 : i32
    return %c0_i32, %arg0, %c0_i32_0 : i32, i32, i32
  }
  func.func @transform_1(%arg0: i32) -> (i32, i32) {
    %c0_i32 = arith.constant 0 : i32
    %c0_i32_0 = arith.constant 0 : i32
    return %arg0, %c0_i32 : i32, i32
  }
  func.func @transform_2(%arg0: i32) -> (i32, i32) {
    %c0_i32 = arith.constant 0 : i32
    %c0_i32_0 = arith.constant 0 : i32
    return %arg0, %c0_i32 : i32, i32
  }
  func.func @transform_3(%arg0: i32) -> (i32, i32) {
    %c0_i32 = arith.constant 0 : i32
    %c0_i32_0 = arith.constant 0 : i32
    return %arg0, %c0_i32 : i32, i32
  }
  func.func @transform_4(%arg0: i32) -> (i32, i32) {
    %c0_i32 = arith.constant 0 : i32
    %c0_i32_0 = arith.constant 0 : i32
    return %arg0, %c0_i32 : i32, i32
  }
  func.func @transform_5(%arg0: i32) -> (i32, i32) {
    %c0_i32 = arith.constant 0 : i32
    %c0_i32_0 = arith.constant 0 : i32
    return %arg0, %c0_i32 : i32, i32
  }
}

</mosaic_0001>

<bundles_post_ra>
// kernel: tpu_custom_call.1
= control target key start
LH: loop header
LB: loop body
LE: loop exit
PB: predicated region body
PF: predicated region fallthrough
CT: control target
= control target key end

     0   :  { %11 = vsyncpa [#allocation3], 0  ;;  %s321_s0 = inlined_call_operand.hbm [shape: f32[5,2,128], index: 0, kind: input, shape index: {}]   ;;  %s322_s1 = inlined_call_operand.hbm [shape: s32[2,128], index: 1, kind: input, shape index: {}]   ;;  %s323_s2 = inlined_call_operand.vmem [shape: f32[2,128], index: 2, kind: input, shape index: {}]   ;;  %s324_s3 = inlined_call_operand.vmem [shape: f32[2,128], index: 3, kind: input, shape index: {}]   ;;  %s325_s4 = inlined_call_operand.hbm [shape: f32[2,128], index: 4, kind: output, shape index: {0}]   ;;  %s326_s5 = inlined_call_operand.hbm [shape: f32[2,128], index: 5, kind: output, shape index: {1}]  }
   0x1   :  { %12 = vsyncpa [#allocation6], 0 }
   0x2   :  { %13 = vsyncpa [#allocation4], 0 }
   0x3   :  { %14 = vsyncpa [#allocation9], 0  ;;  %s251_s18 = smov [#allocation2]  }
   0x4   :  { %s20_s19 = sshll.u32 %s251_s18, 4  ;;  %s21_s19 = int_to_ptr.vmem [resolvable:$true] %s20_s19 }
   0x5   :  { %s171_s20 = scalar_lea.vmem %s21_s19, 160  ;;  %p176_p1 = scmp.lt.s32.totalorder %s21_s19, %s21_s19 }
   0x6   :  { %p172_p0 = scmp.ne.s32.totalorder %s21_s19, %s171_s20  ;;  %p177_p2 = scmp.lt.s32.totalorder %s171_s20, %s171_s20 }
   0x8   :  { %p178_p3 = por %p177_p2, %p176_p1 }
   0xa   :  { %p179_p4 = pnand %p178_p3, %p172_p0 }
   0xc   :  { %182 = shalt.err (!%p179_p4)
}
   0xd   :  { %s252_s21 = smov 32   ;;  %s253_s22 = smov 2  }
   0xe   :  { %26 = dma.hbm_to_vmem [thread:$0]  %s321_s0, 160, %s21_s19, [#allocation3], %s252_s21, %s252_s21, %s253_s22  }
   0xf   :  { %s254_s25 = smov [#allocation5]  }
  0x10   :  { %s33_s26 = sshll.u32 %s254_s25, 4  ;;  %s34_s26 = int_to_ptr.vmem [resolvable:$true] %s33_s26 }
  0x11   :  { %s191_s27 = scalar_lea.vmem %s34_s26, 32  ;;  %p196_p6 = scmp.lt.s32.totalorder %s34_s26, %s34_s26 }
  0x12   :  { %p192_p5 = scmp.ne.s32.totalorder %s34_s26, %s191_s27  ;;  %p197_p7 = scmp.lt.s32.totalorder %s191_s27, %s191_s27 }
  0x14   :  { %p198_p8 = por %p197_p7, %p196_p6 }
  0x16   :  { %p199_p9 = pnand %p198_p8, %p192_p5 }
  0x18   :  { %202 = shalt.err (!%p199_p9)
}
  0x19   :  { %36 = dma.hbm_to_vmem [thread:$0]  %s322_s1, 32, %s34_s26, [#allocation6]  }
  0x1a   :  { %243 = dma.done.wait [#allocation3], 160  }
  0x1b   :  { %244 = vsyncadd [#allocation3], 4294967136 }
  0x1c   :  { %245 = dma.done.wait [#allocation6], 32  }
  0x1d   :  { %246 = vsyncadd [#allocation6], 4294967264  ;;  %v50_v0 = vld [vmem:[#allocation2] sm:$0x3]  ;;  %v52_v1 = vld [vmem:[#allocation2 + $0x2] sm:$0x3] }
  0x1e   :  { %v54_v2 = vld [vmem:[#allocation2 + $0x4] sm:$0x3]  ;;  %v59_v3 = vmax.f32 %v50_v0, %v52_v1  ;;  %v294_v4 = vld [vmem:[#allocation5] sm:$0x3]  ;;  %v56_v5 = vld [vmem:[#allocation2 + $0x6] sm:$0x3] }
  0x1f   :  { %vm79_vm0 = vcmp.eq.s32.totalorder %v294_v4, 2  ;;  %vm91_vm1 = vcmp.eq.s32.totalorder %v294_v4, 4  ;;  %v48_v7 = vld [vmem:[%s323_s2] sm:$0x3]  ;;  %v58_v9 = vld [vmem:[#allocation2 + $0x8] sm:$0x3] }
  0x20   :  { %v60_v6 = vmax.f32 %v59_v3, %v54_v2  ;;  %v49_v8 = vld [vmem:[%s324_s3] sm:$0x3]  ;;  %vm103_vm2 = vmor %vm79_vm0, %vm91_vm1  ;;  %v255_v12 = vmov 0.0   ;;  %s256_s7 = smov [#allocation8]  }
  0x21   :  { %v106_v10 = vmul.f32 0.0078125, %v49_v8  ;;  %v141_v13 = vsel %vm103_vm2, 1.0, %v255_v12  ;;  %s127_s8 = sshll.u32 %s256_s7, 4  ;;  %s128_s8 = int_to_ptr.vmem [resolvable:$true] %s127_s8 }
  0x22   :  { %v61_v11 = vmax.f32 %v60_v6, %v56_v5  ;;  %s203_s2 = scalar_lea.vmem %s128_s8, 32  ;;  %p208_p11 = scmp.lt.s32.totalorder %s128_s8, %s128_s8 }
  0x23   :  { %v107_v14 = vsub.f32 %v48_v7, %v106_v10  ;;  %p204_p10 = scmp.ne.s32.totalorder %s128_s8, %s203_s2  ;;  %p209_p12 = scmp.lt.s32.totalorder %s203_s2, %s203_s2 }
  0x24   :  { %v62_v15 = vmax.f32 %v61_v11, %v58_v9 }
  0x25   :  { %v108_v16 = vmul.f32 %v141_v13, %v107_v14  ;;  %p210_p13 = por %p209_p12, %p208_p11 }
  0x26   :  { %v63_v17 = vsub.f32 %v50_v0, %v62_v15  ;;  %v69_v18 = vsub.f32 %v52_v1, %v62_v15  ;;  %v75_v19 = vsub.f32 %v54_v2, %v62_v15  ;;  %v81_v20 = vsub.f32 %v56_v5, %v62_v15 }
  0x27   :  { %v87_v21 = vsub.f32 %v58_v9, %v62_v15  ;;  %v109_v22 = vmul.f32 %v108_v16, %v108_v16  ;;  %p211_p0 = pnand %p210_p13, %p204_p10 }
  0x28   :  { %v64_v23 = vmul.f32 1.442695, %v63_v17  ;;  %v70_v24 = vmul.f32 1.442695, %v69_v18  ;;  %v76_v25 = vmul.f32 1.442695, %v75_v19 }
  0x29   :  { %v82_v26 = vmul.f32 1.442695, %v81_v20  ;;  %110 = vst [vmem:[#allocation8] sm:$0x3] %v109_v22 }
  0x2a   :  { %149 = vpow2.f32 %v64_v23 }
  0x2b   :  { %214 = shalt.err (!%p211_p0)
}
  0x2c   :  { %130 = dma.vmem_to_hbm [thread:$0]  %s128_s8, 32, %s326_s5, [#allocation9]   ;;  %151 = vpow2.f32 %v70_v24  ;;  %v88_v27 = vmul.f32 1.442695, %v87_v21  ;;  %vm67_vm3 = vcmp.eq.s32.totalorder %v294_v4, 0  ;;  %vm73_vm4 = vcmp.eq.s32.totalorder %v294_v4, 1 }
  0x2d   :  { %153 = vpow2.f32 %v76_v25  ;;  %v68_v37 = vsel %vm67_vm3, %v63_v17, 0.0  ;;  %vm85_vm5 = vcmp.eq.s32.totalorder %v294_v4, 3  ;;  %s257_s5 = smov [#allocation7]  }
  0x2e   :  { %155 = vpow2.f32 %v82_v26  ;;  %v74_v38 = vsel %vm73_vm4, %v69_v18, %v68_v37  ;;  %s117_s10 = sshll.u32 %s257_s5, 4  ;;  %s118_s10 = int_to_ptr.vmem [resolvable:$true] %s117_s10 }
  0x2f   :  { %157 = vpow2.f32 %v88_v27  ;;  %v80_v39 = vsel %vm79_vm0, %v75_v19, %v74_v38  ;;  %s223_s11 = scalar_lea.vmem %s118_s10, 32  ;;  %p228_p2 = scmp.lt.s32.totalorder %s118_s10, %s118_s10 }
  0x30   :  { %v86_v40 = vsel %vm85_vm5, %v81_v20, %v80_v39  ;;  %p224_p1 = scmp.ne.s32.totalorder %s118_s10, %s223_s11  ;;  %p229_p3 = scmp.lt.s32.totalorder %s223_s11, %s223_s11 }
  0x31   :  { %v92_v42 = vsel %vm91_vm1, %v87_v21, %v86_v40 }
  0x32   :  { %p230_p4 = por %p229_p3, %p228_p2 }
  0x34   :  { %p231_p5 = pnand %p230_p4, %p224_p1 }
  0x37   :  { %v150_v28 = vpop.eup %149 }
  0x39   :  { %v152_v29 = vpop.eup %151 }
  0x3a   :  { %v154_v30 = vpop.eup %153  ;;  %v72_v31 = vadd.f32 %v152_v29, %v150_v28 }
  0x3b   :  { %v156_v32 = vpop.eup %155 }
  0x3c   :  { %v78_v33 = vadd.f32 %v154_v30, %v72_v31  ;;  %v158_v34 = vpop.eup %157 }
  0x3e   :  { %v84_v35 = vadd.f32 %v156_v32, %v78_v33 }
  0x40   :  { %v90_v36 = vadd.f32 %v158_v34, %v84_v35 }
  0x42   :  { %159 = vlog2.f32 %v90_v36 }
  0x4f   :  { %v160_v41 = vpop.eup %159 }
  0x50   :  { %v94_v43 = vmul.f32 0.6931472, %v160_v41 }
  0x52   :  { %v95_v44 = vsub.f32 %v94_v43, %v92_v42 }
  0x54   :  { %v96_v45 = vsub.f32 0.0, %v95_v44 }
  0x56   :  { %v97_v46 = vmul.f32 1.442695, %v96_v45 }
  0x58   :  { %161 = vpow2.f32 %v97_v46 }
  0x65   :  { %v162_v47 = vpop.eup %161 }
  0x66   :  { %v99_v48 = vsub.f32 1.0, %v162_v47 }
  0x68   :  { %v100_v49 = vmul.f32 %v99_v48, %v99_v48 }
  0x6a   :  { %v101_v50 = vmul.f32 %v100_v49, %v95_v44 }
  0x6c   :  { %102 = vst [vmem:[#allocation7] sm:$0x3] %v101_v50 }
  0x6d   :  { %234 = shalt.err (!%p231_p5)
}
  0x6e   :  { %120 = dma.vmem_to_hbm [thread:$0]  %s118_s10, 32, %s325_s4, [#allocation4]  }
  0x6f   :  { %247 = dma.done.wait [#allocation4], 32  }
  0x70   :  { %248 = vsyncadd [#allocation4], 4294967264 }
  0x71   :  { %249 = dma.done.wait [#allocation9], 32  }
  0x72   :  { %250 = vsyncadd [#allocation9], 4294967264 }
  0x73   :  { %137 = vsyncpa [#allocation3], 1 }
  0x74   :  { %138 = vsyncpa [#allocation6], 1 }
  0x75   :  { %139 = vsyncpa [#allocation4], 1 }
  0x76   :  { %140 = vsyncpa [#allocation9], 1 }

</bundles_post_ra>
